<compile_context>
chip_gen: v7x
topology: tpu7x:2x2x1
jax: 0.10.0
libtpu: 0.0.40
codegen_flags: <defaults>
</compile_context>

<pallas_src>
import jax
import jax.numpy as jnp
from jax import lax
from jax.experimental import pallas as pl
from jax.experimental.pallas import tpu as pltpu


# ---------------------------------------------------------------------------
# Kernels
# ---------------------------------------------------------------------------

def _kernel_feature_last(v_ref, e_ref, p_ref, vout_ref, eout_ref):
    """dim on the lane axis (used when dim >= 128).

    Blocks: v/e/vout/eout = (TB, dim); p = (8, dim) resident
            (rows 0..3 = w_vv,w_ve,w_ev,w_ee; rows 4,5 = bias_v,bias_e).
    """
    v = v_ref[...]                      # (TB, dim)
    e = e_ref[...]
    w4 = p_ref[0:4, :]                  # (4, dim)
    bias_v = p_ref[4:5, :]              # (1, dim)
    bias_e = p_ref[5:6, :]

    dn = (((1,), (1,)), ((), ()))       # contract on dim
    d_e = lax.dot_general(e, w4, dn, preferred_element_type=jnp.float32)  # (TB, 4)
    d_v = lax.dot_general(v, w4, dn, preferred_element_type=jnp.float32)  # (TB, 4)

    s_vv = d_e[:, 0:1]                  # e . w_vv
    s_ve = d_e[:, 1:2]                  # e . w_ve
    s_ev = d_v[:, 2:3]                  # v . w_ev
    s_ee = d_v[:, 3:4]                  # v . w_ee

    vout_ref[...] = (v * s_vv + e * s_ev + bias_v).astype(vout_ref.dtype)
    eout_ref[...] = (v * s_ve + e * s_ee + bias_e).astype(eout_ref.dtype)


def _kernel_batch_lanes(vt_ref, et_ref, w_ref, bt_ref, vout_ref, eout_ref):
    """batch on the lane axis (used when dim < 128).

    Blocks: vt/et/vout/eout = (dim, TB); w = (8, dim) resident;
            bt = (dim, 2) resident (col 0 = bias_v, col 1 = bias_e).
    """
    vt = vt_ref[...]                    # (dim, TB)
    et = et_ref[...]
    w4 = w_ref[0:4, :]                  # (4, dim)
    bias_v = bt_ref[:, 0:1]             # (dim, 1)
    bias_e = bt_ref[:, 1:2]

    d_e = jnp.dot(w4, et, preferred_element_type=jnp.float32)   # (4, TB)
    d_v = jnp.dot(w4, vt, preferred_element_type=jnp.float32)   # (4, TB)

    s_vv = d_e[0:1, :]                  # (1, TB)
    s_ve = d_e[1:2, :]
    s_ev = d_v[2:3, :]
    s_ee = d_v[3:4, :]

    vout_ref[...] = (vt * s_vv + et * s_ev + bias_v).astype(vout_ref.dtype)
    eout_ref[...] = (vt * s_ve + et * s_ee + bias_e).astype(eout_ref.dtype)


# ---------------------------------------------------------------------------
# Tile planning + wrapper
# ---------------------------------------------------------------------------

_STREAM_BUDGET = 24 * 1024 * 1024   # double-buffered v/e/vout/eout working set
_VMEM_LIMIT = 48 * 1024 * 1024      # > v5e/v6e defaults, < v7x 64 MiB physical


def _plan_tiles(B, dim, itemsize, *, align, cap, single_block_max):
    """Pick (tile, n_steps): biggest tile fitting the VMEM budget, >=2 steps."""
    if B <= single_block_max:
        return B, 1                                  # single full-array block
    t_max = _STREAM_BUDGET // (2 * 4 * dim * itemsize)
    t_max = max(align, (t_max // align) * align)
    t_max = min(t_max, cap)
    n = max(2, pl.cdiv(B, t_max))                    # >=2 steps for v7x megacore
    tile = pl.cdiv(pl.cdiv(B, n), align) * align     # pad per-block, not per-tile
    return tile, n


def cross_compress_unit(v, e, W, Bz):
    """v, e: (B, dim). W: (4, dim) rows [w_vv, w_ve, w_ev, w_ee]. Bz: (2, dim)."""
    B, dim = v.shape
    itemsize = jnp.dtype(v.dtype).itemsize

    # Fused resident parameter block: rows 0-3 weights, rows 4-5 biases, 6-7 pad.
    P = jnp.zeros((8, dim), dtype=jnp.float32)
    P = P.at[0:4].set(W.astype(jnp.float32))
    P = P.at[4:6].set(Bz.astype(jnp.float32))

    cparams = pltpu.CompilerParams(
        dimension_semantics=("parallel",),
        vmem_limit_bytes=_VMEM_LIMIT,
    )

    if dim >= 128:
        # Feature-last layout: dim already lane-dense.
        tile, n = _plan_tiles(B, dim, itemsize, align=8, cap=2048,
                              single_block_max=8)
        Bp = tile * n
        v_in, e_in = v, e
        if Bp != B:
            pad = Bp - B
            v_in = jnp.pad(v, ((0, pad), (0, 0)))
            e_in = jnp.pad(e, ((0, pad), (0, 0)))

        batch_spec = pl.BlockSpec((tile, dim), lambda i: (i, 0))
        param_spec = pl.BlockSpec((8, dim), lambda i: (0, 0))

        v_out, e_out = pl.pallas_call(
            _kernel_feature_last,
            grid=(n,),
            in_specs=[batch_spec, batch_spec, param_spec],
            out_specs=(batch_spec, batch_spec),
            out_shape=(jax.ShapeDtypeStruct((Bp, dim), v.dtype),
                       jax.ShapeDtypeStruct((Bp, dim), v.dtype)),
            compiler_params=cparams,
        )(v_in, e_in, P)

        if Bp != B:
            v_out = v_out[:B]
            e_out = e_out[:B]
        return v_out, e_out

    # dim < 128: batch on the lane axis for lane-dense vregs / DMAs / stores.
    tile, n = _plan_tiles(B, dim, itemsize, align=128, cap=8192,
                          single_block_max=128)
    Bp = tile * n
    vt = v.T                                  # (dim, B)
    et = e.T
    if Bp != B:
        pad = Bp - B
        vt = jnp.pad(vt, ((0, 0), (0, pad)))
        et = jnp.pad(et, ((0, 0), (0, pad)))
    BzT = Bz.T.astype(jnp.float32)            # (dim, 2)

    lane_spec = pl.BlockSpec((dim, tile), lambda i: (0, i))
    w_spec = pl.BlockSpec((8, dim), lambda i: (0, 0))
    b_spec = pl.BlockSpec((dim, 2), lambda i: (0, 0))

    vt_out, et_out = pl.pallas_call(
        _kernel_batch_lanes,
        grid=(n,),
        in_specs=[lane_spec, lane_spec, w_spec, b_spec],
        out_specs=(lane_spec, lane_spec),
        out_shape=(jax.ShapeDtypeStruct((dim, Bp), v.dtype),
                   jax.ShapeDtypeStruct((dim, Bp), v.dtype)),
        compiler_params=cparams,
    )(vt, et, P, BzT)

    v_out = vt_out[:, :B].T
    e_out = et_out[:, :B].T
    return v_out, e_out


# ---------------------------------------------------------------------------
# Pure-JAX reference (mirrors the PyTorch forward op-for-op)
# ---------------------------------------------------------------------------

def reference(v, e, W, Bz):
    B, dim = v.shape
    c = jnp.einsum("bi,bj->bij", v, e)                 # bmm
    ct = jnp.swapaxes(c, 2, 1)
    c2 = c.reshape(-1, dim)
    ct2 = ct.reshape(-1, dim)
    w_vv, w_ve, w_ev, w_ee = W[0], W[1], W[2], W[3]
    v_out = c2 @ w_vv + ct2 @ w_ev
    e_out = c2 @ w_ve + ct2 @ w_ee
    return (v_out.reshape(-1, dim) + Bz[0],
            e_out.reshape(-1, dim) + Bz[1])


if __name__ == "__main__":
    key = jax.random.PRNGKey(0)

    def make_case(key, B, dim):
        kv, ke, kw, kb = jax.random.split(key, 4)
        v = jax.random.normal(kv, (B, dim), dtype=jnp.float32)
        e = jax.random.normal(ke, (B, dim), dtype=jnp.float32)
        W = jax.random.normal(kw, (4, dim), dtype=jnp.float32) * 0.1
        Bz = jax.random.normal(kb, (2, dim), dtype=jnp.float32) * 0.01
        return v, e, W, Bz

    cases = [
        (256, 128),   # feature-last path, 2-step batch grid, no pad
        (100, 128),   # feature-last path, ragged batch (small pad on last block)
        (512, 32),    # batch-on-lanes path, 2-step lane grid, no pad
        (10, 32),     # batch-on-lanes path, tiny single full block
    ]

    keys = jax.random.split(key, len(cases))
    for (B, dim), k in zip(cases, keys):
        v, e, W, Bz = make_case(k, B, dim)
        v_out, e_out = cross_compress_unit(v, e, W, Bz)
        jax.block_until_ready((v_out, e_out))
        v_ref, e_ref = reference(v, e, W, Bz)
        assert v_out.shape == (B, dim) and e_out.shape == (B, dim)
        assert jnp.allclose(v_out, v_ref, atol=1e-4, rtol=1e-4), (B, dim, "v")
        assert jnp.allclose(e_out, e_ref, atol=1e-4, rtol=1e-4), (B, dim, "e")

    print("KERNEL_OK")
</pallas_src>

<mosaic_0001>
module attributes {stable_mosaic.version = 11 : i64} {
  func.func @_kernel_feature_last(%arg0: i32, %arg1: memref<128x128xf32, #tpu.memory_space<vmem>>, %arg2: memref<128x128xf32, #tpu.memory_space<vmem>>, %arg3: memref<8x128xf32, #tpu.memory_space<vmem>>, %arg4: memref<128x128xf32, #tpu.memory_space<vmem>>, %arg5: memref<128x128xf32, #tpu.memory_space<vmem>>) attributes {dimension_semantics = [#tpu.dimension_semantics<parallel>], iteration_bounds = array<i64: 2>, scalar_prefetch = 0 : i64, scratch_operands = 0 : i64, tpu.core_type = #tpu.core_type<tc>, window_params = [{transform_indices = @transform_0, window_bounds = array<i64: 128, 128>}, {transform_indices = @transform_1, window_bounds = array<i64: 128, 128>}, {pipeline_mode = #tpu.pipeline_mode<synchronous>, transform_indices = @transform_2, window_bounds = array<i64: 8, 128>}, {transform_indices = @transform_3, window_bounds = array<i64: 128, 128>}, {transform_indices = @transform_4, window_bounds = array<i64: 128, 128>}]} {
    %c0 = arith.constant 0 : index
    %c0_0 = arith.constant 0 : index
    %0 = vector.load %arg1[%c0, %c0_0] : memref<128x128xf32, #tpu.memory_space<vmem>>, vector<128x128xf32>
    %c0_1 = arith.constant 0 : index
    %c0_2 = arith.constant 0 : index
    %1 = vector.load %arg2[%c0_1, %c0_2] : memref<128x128xf32, #tpu.memory_space<vmem>>, vector<128x128xf32>
    %c0_3 = arith.constant 0 : index
    %c0_4 = arith.constant 0 : index
    %2 = vector.load %arg3[%c0_3, %c0_4] : memref<8x128xf32, #tpu.memory_space<vmem>>, vector<4x128xf32>
    %c4 = arith.constant 4 : index
    %c0_5 = arith.constant 0 : index
    %3 = vector.load %arg3[%c4, %c0_5] : memref<8x128xf32, #tpu.memory_space<vmem>>, vector<1x128xf32>
    %c5 = arith.constant 5 : index
    %c0_6 = arith.constant 0 : index
    %4 = vector.load %arg3[%c5, %c0_6] : memref<8x128xf32, #tpu.memory_space<vmem>>, vector<1x128xf32>
    %cst = arith.constant dense<0.000000e+00> : vector<128x4xf32>
    %5 = tpu.matmul %1, %2, %cst {dimension_numbers = #tpu.dot_dimension_numbers<[1], [1], [0], [0], [0, 0, 1, 0], [], []>} : vector<128x128xf32>, vector<4x128xf32>, vector<128x4xf32> -> vector<128x4xf32>
    %cst_7 = arith.constant dense<0.000000e+00> : vector<128x4xf32>
    %6 = tpu.matmul %0, %2, %cst_7 {dimension_numbers = #tpu.dot_dimension_numbers<[1], [1], [0], [0], [0, 0, 1, 0], [], []>} : vector<128x128xf32>, vector<4x128xf32>, vector<128x4xf32> -> vector<128x4xf32>
    %7 = vector.extract_strided_slice %5 {offsets = [0, 0], sizes = [128, 1], strides = [1, 1]} : vector<128x4xf32> to vector<128x1xf32>
    %8 = vector.extract_strided_slice %5 {offsets = [0, 1], sizes = [128, 1], strides = [1, 1]} : vector<128x4xf32> to vector<128x1xf32>
    %9 = vector.extract_strided_slice %6 {offsets = [0, 2], sizes = [128, 1], strides = [1, 1]} : vector<128x4xf32> to vector<128x1xf32>
    %10 = vector.extract_strided_slice %6 {offsets = [0, 3], sizes = [128, 1], strides = [1, 1]} : vector<128x4xf32> to vector<128x1xf32>
    %11 = vector.broadcast %7 : vector<128x1xf32> to vector<128x128xf32>
    %12 = arith.mulf %0, %11 : vector<128x128xf32>
    %13 = vector.broadcast %9 : vector<128x1xf32> to vector<128x128xf32>
    %14 = arith.mulf %1, %13 : vector<128x128xf32>
    %15 = arith.addf %12, %14 : vector<128x128xf32>
    %16 = vector.broadcast %3 : vector<1x128xf32> to vector<128x128xf32>
    %17 = arith.addf %15, %16 : vector<128x128xf32>
    %c0_8 = arith.constant 0 : index
    %c0_9 = arith.constant 0 : index
    %18 = vector.load %arg4[%c0_8, %c0_9] : memref<128x128xf32, #tpu.memory_space<vmem>>, vector<128x128xf32>
    tpu.vector_store %arg4[%c0_8, %c0_9], %17 {strides = array<i32>} : memref<128x128xf32, #tpu.memory_space<vmem>>, vector<128x128xf32>,
    %19 = vector.broadcast %8 : vector<128x1xf32> to vector<128x128xf32>
    %20 = arith.mulf %0, %19 : vector<128x128xf32>
    %21 = vector.broadcast %10 : vector<128x1xf32> to vector<128x128xf32>
    %22 = arith.mulf %1, %21 : vector<128x128xf32>
    %23 = arith.addf %20, %22 : vector<128x128xf32>
    %24 = vector.broadcast %4 : vector<1x128xf32> to vector<128x128xf32>
    %25 = arith.addf %23, %24 : vector<128x128xf32>
    %c0_10 = arith.constant 0 : index
    %c0_11 = arith.constant 0 : index
    %26 = vector.load %arg5[%c0_10, %c0_11] : memref<128x128xf32, #tpu.memory_space<vmem>>, vector<128x128xf32>
    tpu.vector_store %arg5[%c0_10, %c0_11], %25 {strides = array<i32>} : memref<128x128xf32, #tpu.memory_space<vmem>>, vector<128x128xf32>,
    return
  }
  func.func @transform_0(%arg0: i32) -> (i32, i32) {
    %c0_i32 = arith.constant 0 : i32
    %c0_i32_0 = arith.constant 0 : i32
    return %arg0, %c0_i32 : i32, i32
  }
  func.func @transform_1(%arg0: i32) -> (i32, i32) {
    %c0_i32 = arith.constant 0 : i32
    %c0_i32_0 = arith.constant 0 : i32
    return %arg0, %c0_i32 : i32, i32
  }
  func.func @transform_2(%arg0: i32) -> (i32, i32) {
    %c0_i32 = arith.constant 0 : i32
    %c0_i32_0 = arith.constant 0 : i32
    %c0_i32_1 = arith.constant 0 : i32
    return %c0_i32, %c0_i32_0 : i32, i32
  }
  func.func @transform_3(%arg0: i32) -> (i32, i32) {
    %c0_i32 = arith.constant 0 : i32
    %c0_i32_0 = arith.constant 0 : i32
    return %arg0, %c0_i32 : i32, i32
  }
  func.func @transform_4(%arg0: i32) -> (i32, i32) {
    %c0_i32 = arith.constant 0 : i32
    %c0_i32_0 = arith.constant 0 : i32
    return %arg0, %c0_i32 : i32, i32
  }
}

</mosaic_0001>

<bundles_post_ra>
// kernel: tpu_custom_call.1
= control target key start
LH: loop header
LB: loop body
LE: loop exit
PB: predicated region body
PF: predicated region fallthrough
CT: control target
= control target key end

     0   :  { %s2435_s0 = inlined_call_operand.hbm [shape: f32[256,128], index: 0, kind: input, shape index: {}]   ;;  %s2436_s1 = inlined_call_operand.hbm [shape: f32[256,128], index: 1, kind: input, shape index: {}]   ;;  %s2437_s2 = inlined_call_operand.hbm [shape: f32[8,128], index: 2, kind: input, shape index: {}]   ;;  %s2438_s3 = inlined_call_operand.hbm [shape: f32[256,128], index: 3, kind: output, shape index: {0}]   ;;  %s2439_s4 = inlined_call_operand.hbm [shape: f32[256,128], index: 4, kind: output, shape index: {1}]  }
   0x1   :  { %2445 = sst [smem:[#allocation16_spill]] %s2435_s0 }
   0x2   :  { %10 = vsyncpa [#allocation3], 0 }
   0x3   :  { %12 = vsyncpa [#allocation3 + $0x1], 0 }
   0x4   :  { %13 = vsyncpa [#allocation6], 0 }
   0x5   :  { %15 = vsyncpa [#allocation6 + $0x1], 0 }
   0x6   :  { %16 = vsyncpa [#allocation4], 0 }
   0x7   :  { %18 = vsyncpa [#allocation4 + $0x1], 0 }
   0x8   :  { %19 = vsyncpa [#allocation10], 0 }
   0x9   :  { %21 = vsyncpa [#allocation10 + $0x1], 0  ;;  %s1725_s15 = smov 0   ;;  %s1727_s16 = smov 0  }
   0xa   :  { %s1729_s17 = smov 0   ;;  %s1731_s18 = smov 0  }
   0xb LB: > { %s1746_s19 = sadd.s32 4294967295, %s1685_s18   ;;  %s1236_s20 = sadd.s32 4294967294, %s1685_s18   ;;  %s1685_s18 = sphi %s1731_s18, %s2466_s18   ;;  %s1681_s17 = sphi %s1729_s17, %s2465_s17   ;;  %s1677_s16 = sphi %s1727_s16, %s2464_s16   ;;  %s1673_s15 = sphi %s1725_s15, %s2463_s15  }
   0xc   : > { %s1750_s21 = sadd.s32 1, %s1685_s18   ;;  %s34_s22 = sadd.s32 1, %s1681_s17 }
   0xd   : > { %s31_s23 = ssub.s32 %s1685_s18, %s1750_s21  ;;  %p41_p0 = scmp.ne.s32.totalorder %s1681_s17, %s1677_s16 }
   0xe   : > { %p32_p1 = scmp.eq.s32.totalorder %s31_s23, 0  ;;  %p42_p2 = scmp.eq.s32.totalorder %s1685_s18, 0 }
   0xf   : > { %p47_p3 = scmp.ne.s32.totalorder %s1677_s16, %s1673_s15  ;;  %p2440_p4 = scmp.eq.s32.totalorder %s1746_s19, 0 }
  0x10   : > { %s1762_s24 = scalar_select %p32_p1, %s1681_s17, %s34_s22  }
  0x11   : > { %p1764_p5 = por %p42_p2, %p41_p0  ;;  %p1770_p6 = por %p2440_p4, %p47_p3 }
  0x12   : > { %p118_p7 = scmp.eq.s32.totalorder %s1746_s19, 1  ;;  %p124_p8 = scmp.eq.s32.totalorder %s1236_s20, 1 }
  0x13   : > { %s2447_s26 = scalar_select %p1770_p6, 1, 0 }
  0x14   : > { %p1237_p9 = scmp.ge.s32.totalorder %s1685_s18, 1  ;;  %p157_p10 = scmp.lt.s32.totalorder %s1685_s18, 3 }
  0x15   : > { %p1777_p11 = por %p118_p7, %p41_p0  ;;  %p1781_p12 = por %p124_p8, %p47_p3 }
  0x16   : > { %p1785_p13 = pnand %p1237_p9, %p157_p10  ;;  %s1687_s30 = smov [#allocation7]  }
  0x17   : > { %s2448_s27 = scalar_select %p1777_p11, 1, 0 }
  0x18   : > { %s2449_s28 = scalar_select %p1781_p12, 1, 0 }
  0x19   : > { %s2450_s29 = scalar_select %p1785_p13, 1, 0 }
  0x1a   : > { %p1364_p2 = pneg %p1785_p13  ;;  %s170_s5 = sshll.u32 %s1687_s30, 4  ;;  %s171_s5 = int_to_ptr.vmem [resolvable:$true] %s170_s5 }
  0x1b   : > { %p1383_p4 = scmp.lt.s32.totalorder %s1685_s18, 2  ;;  %p2451_p0 = scmp.eq.s32.totalorder %s1746_s19, 0 }
  0x1c   : > { %s181_s7 = sand.u32 1, %s1681_s17   ;;  %s1491_s12 = scalar_lea.hbm %s2437_s2, 128 }
  0x1d   : > { %p1795_p7 = pnand %p1364_p2, %p2451_p0  ;;  %p1802_p3 = pnand %p1383_p4, %p1764_p5 }
  0x1e   : > { %s1806_s9 = sshll.u32 %s181_s7, 7  ;;  %p1492_p8 = scmp.ne.s32.totalorder %s2437_s2, %s1491_s12 }
  0x1f   : > { %s2453_s8 = scalar_select %p1802_p3, 1, 0 }
  0x20   : > { %p1493_p9 = pneg %p1795_p7  ;;  %p1498_p4 = scmp.lt.u32.totalorder %s1491_s12, %s2437_s2 }
  0x22   : > { %p1494_p10 = pnand %p1493_p9, %p1492_p8 }
  0x24   : > { %p1495_p2 = pneg %p1494_p10 }
  0x26   : > { %p1500_p5 = pnand %p1498_p4, %p1495_p2 }
  0x28   : > { %1503 = shalt.err (!%p1500_p5)
}
  0x29   : > { %s1504_s23 = scalar_lea.vmem %s171_s5, 128  ;;  %p1512_p11 = scmp.lt.s32.totalorder %s171_s5, %s171_s5 }
  0x2a   : > { %p1505_p0 = scmp.ne.s32.totalorder %s171_s5, %s1504_s23  ;;  %p1513_p6 = scmp.lt.s32.totalorder %s1504_s23, %s1504_s23 }
  0x2c   : > { %p1507_p1 = pnand %p1505_p0, %p1493_p9  ;;  %p1514_p13 = por %p1513_p6, %p1512_p11 }
  0x2e   : > { %p1508_p12 = pneg %p1507_p1 }
  0x30   : > { %p1515_p3 = pnand %p1514_p13, %p1508_p12 }
  0x32   : > { %1518 = shalt.err (!%p1515_p3)
}
  0x33   : > { %1367 = dma.hbm_to_vmem [thread:$0]  (!%p1795_p7), %s2437_s2, 128, %s171_s5, [#allocation6]  }
  0x34   : > { %s1262_s10 = sshll.u32 %s1685_s18, 11  ;;  %s185_s11 = scalar_lea.vmem [#allocation2], %s1806_s9 }
  0x35   : > { %s192_s12 = sshll.u32 %s185_s11, 4  ;;  %s2454_s0 = sld [smem:[#allocation16_spill]]  ;;  %s1833_s12 = int_to_ptr.vmem [resolvable:$true] %s192_s12 }
  0x36   : > { %s1835_s6 = scalar_lea.sflag [#allocation3], %s181_s7  ;;  %p2455_p11 = scmp.ne.s32.totalorder %s2453_s8, 0 }
  0x38   : > { %p1521_p12 = pneg %p2455_p11 }
  0x3b   : > { %s1831_s20 = scalar_lea.hbm %s2454_s0, %s1262_s10  ;;  %s1524_s25 = scalar_lea.hbm %s2454_s0, 4096 }
  0x3c   : > { %s1519_s22 = scalar_lea.hbm %s1831_s20, 2048  ;;  %p1525_p7 = scmp.lt.u32.totalorder %s1831_s20, %s2454_s0 }
  0x3d   : > { %p1520_p6 = scmp.ne.s32.totalorder %s1831_s20, %s1519_s22  ;;  %p1526_p3 = scmp.lt.u32.totalorder %s1524_s25, %s1519_s22 }
  0x3e   : > { %p1528_p9 = scmp.lt.u32.totalorder %s1519_s22, %s1831_s20 }
  0x3f   : > { %p1522_p13 = pnand %p1521_p12, %p1520_p6  ;;  %p1527_p8 = por %p1526_p3, %p1525_p7 }
  0x41   : > { %p1523_p1 = pneg %p1522_p13  ;;  %p1529_p10 = por %p1528_p9, %p1527_p8 }
  0x43   : > { %p1530_p2 = pnand %p1529_p10, %p1523_p1 }
  0x45   : > { %1533 = shalt.err (!%p1530_p2)
}
  0x46   : > { %s1534_s7 = scalar_lea.vmem %s1833_s12, 2048  ;;  %s1688_s13 = smov [#allocation2]  }
  0x47   : > { %p1535_p4 = scmp.ne.s32.totalorder %s1833_s12, %s1534_s7  ;;  %s1539_s14 = sshll.u32 %s1688_s13, 4  ;;  %s1540_s14 = int_to_ptr.vmem [resolvable:$false] %s1539_s14 }
  0x48   : > { %s1541_s5 = scalar_lea.vmem %s1540_s14, 4096  ;;  %p1542_p6 = scmp.lt.s32.totalorder %s1833_s12, %s1540_s14 }
  0x49   : > { %p1537_p5 = pnand %p1535_p4, %p1521_p12  ;;  %p1543_p13 = scmp.lt.s32.totalorder %s1541_s5, %s1534_s7 }
  0x4b   : > { %p1538_p0 = pneg %p1537_p5  ;;  %p1544_p7 = por %p1543_p13, %p1542_p6 }
  0x4d   : > { %p1545_p3 = pnand %p1544_p7, %p1538_p0 }
  0x4f   : > { %1548 = shalt.err (!%p1545_p3)
}
  0x50   : > { %s1689_s22 = smov 128   ;;  %s1690_s23 = smov 8  }
  0x51   : > { %1371 = dma.hbm_to_vmem [thread:$0]  (!%p2455_p11), %s1831_s20, 2048, %s1833_s12, %s1835_s6, %s1689_s22, %s1689_s22, %s1690_s23  }
  0x52   : > { %s1871_s11 = scalar_lea.hbm %s2436_s1, %s1262_s10  ;;  %s206_s7 = scalar_lea.vmem [#allocation5], %s1806_s9 }
  0x53   : > { %s213_s13 = sshll.u32 %s206_s7, 4  ;;  %s202_s14 = sand.u32 1, %s1685_s18   ;;  %s1875_s13 = int_to_ptr.vmem [resolvable:$true] %s213_s13 }
  0x54   : > { %s1877_s5 = scalar_lea.sflag [#allocation6], %s202_s14  ;;  %s1549_s0 = scalar_lea.hbm %s1871_s11, 2048 }
  0x55   : > { %p1550_p1 = scmp.ne.s32.totalorder %s1871_s11, %s1549_s0  ;;  %s1554_s20 = scalar_lea.hbm %s2436_s1, 4096 }
  0x56   : > { %p1555_p10 = scmp.lt.u32.totalorder %s1871_s11, %s2436_s1  ;;  %p1556_p2 = scmp.lt.u32.totalorder %s1554_s20, %s1549_s0 }
  0x57   : > { %p1552_p8 = pnand %p1550_p1, %p1521_p12  ;;  %p1558_p5 = scmp.lt.u32.totalorder %s1549_s0, %s1871_s11 }
  0x58   : > { %p1557_p4 = por %p1556_p2, %p1555_p10 }
  0x59   : > { %p1553_p9 = pneg %p1552_p8 }
  0x5a   : > { %p1559_p0 = por %p1558_p5, %p1557_p4 }
  0x5c   : > { %p1560_p6 = pnand %p1559_p0, %p1553_p9 }
  0x5e   : > { %1563 = shalt.err (!%p1560_p6)
}
  0x5f   : > { %s1564_s9 = scalar_lea.vmem %s1875_s13, 2048  ;;  %s1691_s30 = smov [#allocation5]  }
  0x60   : > { %p1565_p13 = scmp.ne.s32.totalorder %s1875_s13, %s1564_s9  ;;  %s1569_s7 = sshll.u32 %s1691_s30, 4  ;;  %s1570_s7 = int_to_ptr.vmem [resolvable:$false] %s1569_s7 }
  0x61   : > { %s1571_s14 = scalar_lea.vmem %s1570_s7, 4096  ;;  %p1572_p1 = scmp.lt.s32.totalorder %s1875_s13, %s1570_s7 }
  0x62   : > { %p1567_p7 = pnand %p1565_p13, %p1521_p12  ;;  %p1573_p8 = scmp.lt.s32.totalorder %s1571_s14, %s1564_s9 }
  0x64   : > { %p1568_p3 = pneg %p1567_p7  ;;  %p1574_p10 = por %p1573_p8, %p1572_p1 }
  0x66   : > { %p1575_p2 = pnand %p1574_p10, %p1568_p3 }
  0x68   : > { %1578 = shalt.err (!%p1575_p2)
}
  0x69   : > { %1374 = dma.hbm_to_vmem [thread:$0]  (!%p2455_p11), %s1871_s11, 2048, %s1875_s13, %s1877_s5, %s1689_s22, %s1689_s22, %s1690_s23  }
  0x6a   : > { %p2456_p12 = scmp.ne.s32.totalorder %s2450_s29, 0 }
  0x6b   : > { %s1909_s0 = sand.u32 (!%p2456_p12), 1, %s1677_s16   ;;  %p2457_p9 = scmp.ne.s32.totalorder (!%p2456_p12), %s2447_s26, 0 }
  0x6c   : > { %225 = sbr.rel (%p2456_p12) target bundleno = 668 (0x29c), region = 32  ;;  %s1912_s12 = sshll.u32 (!%p2456_p12), %s1909_s0, 7 }
  0x6d   : > { %s228_s8 = scalar_lea.sflag (!%p2456_p12), [#allocation3], %s1909_s0  ;;  %s1916_s10 = scalar_lea.vmem (!%p2456_p12), [#allocation2], %s1912_s12 }
  0x73   : > { %1652 = dma.done.wait (%p2457_p9), %s228_s8, 2048  }
  0x74   : > { %1654 = vsyncadd (%p2457_p9), %s228_s8, 4294965248  ;;  %s236_s29 = sand.u32 1, %s1746_s19   ;;  %s1924_s23 = scalar_lea.vmem [#allocation5], %s1912_s12 }
  0x75   : > { %s237_s22 = scalar_lea.sflag [#allocation6], %s236_s29 }
  0x76   : > { %1656 = dma.done.wait (%p2457_p9), %s237_s22, 2048  }
  0x77   : > { %1658 = vsyncadd (%p2457_p9), %s237_s22, 4294965248  ;;  %p2458_p11 = scmp.eq.s32.totalorder %s1746_s19, 0 }
  0x79   : > { %1660 = dma.done.wait (%p2458_p11), [#allocation6], 128   ;;  %p2459_p4 = pmov %p2458_p11 }
  0x7a   : > { %v1692_v0 = vmov 2   ;;  %v1693_v1 = vmov 0   ;;  %v315_v2 = vld [vmem:[#allocation7] sm:$0xf]  ;;  %v1943_v5 = vld [vmem:[%s1924_s23 + $0x8] sm:$0xff]  ;;  %v1951_v7 = vld [vmem:[%s1924_s23 + $0x10] sm:$0xff] }
  0x7b   : > { %1662 = vsyncadd (%p2459_p4), [#allocation6], 4294967168  ;;  %1428 = vset.pattern.permute.xlu1 %v1692_v0  ;;  %1427 = vset.pattern.permute.xlu0 %v1693_v1  ;;  %v1937_v3 = vld [vmem:[%s1924_s23] sm:$0xff]  ;;  %v1946_v6 = vld [vmem:[%s1916_s10 + $0x8] sm:$0xff]  ;;  %v1694_v41 = vmov 1   ;;  %v1695_v42 = vmov 3  }
  0x7c   : > { %v1940_v4 = vld [vmem:[%s1916_s10] sm:$0xff]  ;;  %1300 = vmatprep.subr.mxu0 %v315_v2  ;;  %1326 = vmatprep.subr.mxu1 %v315_v2  ;;  %v1954_v8 = vld [vmem:[%s1916_s10 + $0x10] sm:$0xff]  ;;  %v1960_v9 = vld [vmem:[%s1924_s23 + $0x18] sm:$0xff]  ;;  %s2190_s26 = scalar_lea.vmem [#allocation8], %s1912_s12  ;;  %s2201_s11 = scalar_lea.vmem [#allocation9], %s1912_s12 }
  0x7d   : > { %1301 = vmatpush3.xpose.msra.mxu0 %v315_v2  ;;  %1327 = vmatpush3.xpose.msra.mxu1 %v315_v2  ;;  %v1964_v10 = vld [vmem:[%s1916_s10 + $0x18] sm:$0xff]  ;;  %v1967_v11 = vld [vmem:[%s1916_s10 + $0x20] sm:$0xff]  ;;  %v1976_v13 = vld [vmem:[%s1916_s10 + $0x28] sm:$0xff]  ;;  %s1264_s13 = sshll.u32 %s1746_s19, 11  ;;  %s1083_s5 = sshll.u32 %s2190_s26, 4  ;;  %s2343_s5 = int_to_ptr.vmem [resolvable:$true] %s1083_s5 }
  0x7e   : > { %1302 = vmatprep.mubr.f32.mxu0 %v1937_v3  ;;  %1328 = vmatprep.mubr.f32.mxu1 %v1940_v4  ;;  %v1970_v12 = vld [vmem:[%s1924_s23 + $0x20] sm:$0xff]  ;;  %v1980_v14 = vld [vmem:[%s1924_s23 + $0x28] sm:$0xff]  ;;  %v1983_v15 = vld [vmem:[%s1916_s10 + $0x30] sm:$0xff]  ;;  %s2341_s25 = scalar_lea.hbm %s2438_s3, %s1264_s13  ;;  %s1099_s9 = sshll.u32 %s2201_s11, 4  ;;  %s2387_s9 = int_to_ptr.vmem [resolvable:$true] %s1099_s9 }
  0x7f   : > { %v1986_v16 = vld [vmem:[%s1924_s23 + $0x30] sm:$0xff]  ;;  %v1992_v17 = vld [vmem:[%s1916_s10 + $0x38] sm:$0xff]  ;;  %v1999_v19 = vld [vmem:[%s1916_s10 + $0x40] sm:$0xff]  ;;  %s1065_s30 = scalar_lea.sflag [#allocation4], %s1909_s0  ;;  %s1579_s7 = scalar_lea.vmem %s2343_s5, 2048 }
  0x80   : > { %1303 = vmatmul.mubr.f32.vlgmr.msra.gmra.mrb[0].mxu0 %v1943_v5  ;;  %1329 = vmatmul.mubr.f32.vlgmr.msra.gmra.mrb[0].mxu1 %v1946_v6  ;;  %v1996_v18 = vld [vmem:[%s1924_s23 + $0x38] sm:$0xff]  ;;  %v2002_v20 = vld [vmem:[%s1924_s23 + $0x40] sm:$0xff]  ;;  %v2008_v21 = vld [vmem:[%s1916_s10 + $0x48] sm:$0xff]  ;;  %p1580_p5 = scmp.ne.s32.totalorder %s2343_s5, %s1579_s7  ;;  %p2460_p0 = scmp.ne.s32.totalorder %s2448_s27, 0 }
  0x81   : > { %1305 = vmatprep.mubr.f32.mxu0 %v1951_v7  ;;  %1331 = vmatprep.mubr.f32.mxu1 %v1954_v8  ;;  %v2012_v22 = vld [vmem:[%s1924_s23 + $0x48] sm:$0xff]  ;;  %v2015_v23 = vld [vmem:[%s1916_s10 + $0x50] sm:$0xff]  ;;  %v2024_v25 = vld [vmem:[%s1916_s10 + $0x58] sm:$0xff]  ;;  %s1696_s14 = smov [#allocation8]  }
  0x82   : > { %v2018_v24 = vld [vmem:[%s1924_s23 + $0x50] sm:$0xff]  ;;  %v2028_v26 = vld [vmem:[%s1924_s23 + $0x58] sm:$0xff]  ;;  %v2031_v27 = vld [vmem:[%s1916_s10 + $0x60] sm:$0xff]  ;;  %p1581_p6 = pnand %p1580_p5, %p2460_p0  ;;  %s1583_s12 = sshll.u32 %s1696_s14, 4  ;;  %s1584_s12 = int_to_ptr.vmem [resolvable:$false] %s1583_s12 }
  0x83   : > { %v2034_v28 = vld [vmem:[%s1924_s23 + $0x60] sm:$0xff]  ;;  %v2040_v29 = vld [vmem:[%s1916_s10 + $0x68] sm:$0xff]  ;;  %v2047_v31 = vld [vmem:[%s1916_s10 + $0x70] sm:$0xff]  ;;  %s1585_s8 = scalar_lea.vmem %s1584_s12, 4096  ;;  %p1586_p7 = scmp.lt.s32.totalorder %s2343_s5, %s1584_s12 }
  0x84   : > { %1306 = vmatmul.mubr.f32.gmra.mrb[2].mxu0 %v1960_v9  ;;  %1332 = vmatmul.mubr.f32.gmra.mrb[2].mxu1 %v1964_v10  ;;  %v2044_v30 = vld [vmem:[%s1924_s23 + $0x68] sm:$0xff]  ;;  %v2050_v32 = vld [vmem:[%s1924_s23 + $0x70] sm:$0xff]  ;;  %v2056_v33 = vld [vmem:[%s1916_s10 + $0x78] sm:$0xff]  ;;  %p1582_p13 = pneg %p1581_p6  ;;  %p1587_p3 = scmp.lt.s32.totalorder %s1585_s8, %s1579_s7 }
  0x85   : > { %1334 = vmatprep.mubr.f32.mxu1 %v1967_v11  ;;  %1308 = vmatprep.mubr.f32.mxu0 %v1970_v12  ;;  %v2060_v34 = vld [vmem:[%s1924_s23 + $0x78] sm:$0xff] }
  0x86   : > { %p1588_p1 = por %p1587_p3, %p1586_p7 }
  0x88   : > { %1335 = vmatmul.mubr.f32.gmra.mrb[4].mxu1 %v1976_v13  ;;  %1309 = vmatmul.mubr.f32.gmra.mrb[4].mxu0 %v1980_v14  ;;  %p1589_p8 = pnand %p1588_p1, %p1582_p13 }
  0x89   : > { %1337 = vmatprep.mubr.f32.mxu1 %v1983_v15  ;;  %1311 = vmatprep.mubr.f32.mxu0 %v1986_v16 }
  0x8c   : > { %1338 = vmatmul.mubr.f32.gmra.mrb[6].mxu1 %v1992_v17  ;;  %1312 = vmatmul.mubr.f32.gmra.mrb[6].mxu0 %v1996_v18 }
  0x8d   : > { %1340 = vmatprep.mubr.f32.mxu1 %v1999_v19  ;;  %1314 = vmatprep.mubr.f32.mxu0 %v2002_v20 }
  0x90   : > { %1341 = vmatmul.mubr.f32.gmra.mrb[8].mxu1 %v2008_v21  ;;  %1315 = vmatmul.mubr.f32.gmra.mrb[8].mxu0 %v2012_v22 }
  0x91   : > { %1343 = vmatprep.mubr.f32.mxu1 %v2015_v23  ;;  %1317 = vmatprep.mubr.f32.mxu0 %v2018_v24 }
  0x94   : > { %1344 = vmatmul.mubr.f32.gmra.mrb[10].mxu1 %v2024_v25  ;;  %1318 = vmatmul.mubr.f32.gmra.mrb[10].mxu0 %v2028_v26 }
  0x95   : > { %1346 = vmatprep.mubr.f32.mxu1 %v2031_v27  ;;  %1320 = vmatprep.mubr.f32.mxu0 %v2034_v28 }
  0x98   : > { %1347 = vmatmul.mubr.f32.gmra.mrb[12].mxu1 %v2040_v29  ;;  %1321 = vmatmul.mubr.f32.gmra.mrb[12].mxu0 %v2044_v30 }
  0x99   : > { %1349 = vmatprep.mubr.f32.mxu1 %v2047_v31  ;;  %1323 = vmatprep.mubr.f32.mxu0 %v2050_v32 }
  0x9c   : > { %1350 = vmatmul.mubr.f32.gmra.mrb[14].mxu1 %v2056_v33  ;;  %1324 = vmatmul.mubr.f32.gmra.mrb[14].mxu0 %v2060_v34 }
 0x153   : > { %v1304_v35 = vpop.f32.mrb[0].mxu0  ;;  %v1330_v36 = vpop.f32.mrb[0].mxu1 }
 0x154   : > { %615 = vperm.xlu0 %1427, %v1304_v35   ;;  %711 = vperm.xlu1 %1428, %v1330_v36   ;;  %v529_v37 = vpop.f32.mrb[1].mxu1  ;;  %v384_v38 = vpop.f32.mrb[1].mxu0 }
 0x157   : > { %v1307_v39 = vpop.f32.mrb[2].mxu0  ;;  %v1333_v40 = vpop.f32.mrb[2].mxu1 }
 0x158   : > { %1429 = vset.pattern.permute.xlu0 %v1694_v41  ;;  %1430 = vset.pattern.permute.xlu1 %v1695_v42  ;;  %v394_v43 = vpop.f32.mrb[3].mxu0  ;;  %v539_v44 = vpop.f32.mrb[3].mxu1 }
 0x159   : > { %857 = vperm.xlu0 %1429, %v1304_v35   ;;  %937 = vperm.xlu1 %1430, %v1330_v36  }
 0x15b   : > { %v1336_v45 = vpop.f32.mrb[4].mxu1  ;;  %v1310_v46 = vpop.f32.mrb[4].mxu0 }
 0x15c   : > { %v404_v47 = vpop.f32.mrb[5].mxu0  ;;  %v549_v48 = vpop.f32.mrb[5].mxu1 }
 0x15d   : > { %1431 = vset.pattern.permute.xlu0 %v1693_v1  ;;  %1433 = vset.pattern.permute.xlu1 %v1694_v41 }
 0x15e   : > { %610 = vperm.xlu0 %1431, %v384_v38   ;;  %853 = vperm.xlu1 %1433, %v384_v38  }
 0x15f   : > { %v1339_v49 = vpop.f32.mrb[6].mxu1  ;;  %v2068_v50 = vpop.f32.mrb[6].mxu0 }
 0x160   : > { %v2070_v51 = vpop.f32.mrb[7].mxu0  ;;  %v2072_v52 = vpop.f32.mrb[7].mxu1 }
 0x162   : > { %1432 = vset.pattern.permute.xlu0 %v1692_v0  ;;  %1435 = vset.pattern.permute.xlu1 %v1693_v1 }
 0x163   : > { %625 = vperm.xlu1 %1435, %v1307_v39   ;;  %706 = vperm.xlu0 %1432, %v529_v37   ;;  %v2076_v53 = vpop.f32.mrb[8].mxu1  ;;  %v2078_v54 = vpop.f32.mrb[8].mxu0 }
 0x164   : > { %v2080_v55 = vpop.f32.mrb[9].mxu0  ;;  %v2082_v56 = vpop.f32.mrb[9].mxu1 }
 0x167   : > { %1437 = vset.pattern.permute.xlu1 %v1694_v41  ;;  %1434 = vset.pattern.permute.xlu0 %v1695_v42  ;;  %v2086_v57 = vpop.f32.mrb[10].mxu1  ;;  %v2088_v58 = vpop.f32.mrb[10].mxu0 }
 0x168   : > { %865 = vperm.xlu1 %1437, %v1307_v39   ;;  %933 = vperm.xlu0 %1434, %v529_v37   ;;  %v2090_v59 = vpop.f32.mrb[11].mxu0  ;;  %v2092_v60 = vpop.f32.mrb[11].mxu1 }
 0x16b   : > { %v2094_v61 = vpop.f32.mrb[12].mxu1  ;;  %v2096_v62 = vpop.f32.mrb[12].mxu0 }
 0x16c   : > { %1439 = vset.pattern.permute.xlu1 %v1693_v1  ;;  %1436 = vset.pattern.permute.xlu0 %v1692_v0  ;;  %v2100_v63 = vpop.f32.mrb[13].mxu0  ;;  %v2102_v2 = vpop.f32.mrb[13].mxu1 }
 0x16d   : > { %620 = vperm.xlu1 %1439, %v394_v43   ;;  %721 = vperm.xlu0 %1436, %v1333_v40  }
 0x16f   : > { %v2104_v35 = vpop.f32.mrb[14].mxu1  ;;  %v2106_v36 = vpop.f32.mrb[14].mxu0 }
 0x170   : > { %v2108_v37 = vpop.f32.mrb[15].mxu0  ;;  %v2110_v38 = vpop.f32.mrb[15].mxu1 }
 0x171   : > { %1440 = vset.pattern.permute.xlu1 %v1692_v0  ;;  %1438 = vset.pattern.permute.xlu0 %v1695_v42 }
 0x172   : > { %945 = vperm.xlu0 %1438, %v1333_v40   ;;  %716 = vperm.xlu1 %1440, %v539_v44  }
 0x176   : > { %1444 = vset.pattern.permute.xlu0 %v1692_v0  ;;  %1441 = vset.pattern.permute.xlu1 %v1694_v41 }
 0x177   : > { %861 = vperm.xlu1 %1441, %v394_v43   ;;  %731 = vperm.xlu0 %1444, %v1336_v45  }
 0x17b   : > { %1442 = vset.pattern.permute.xlu1 %v1695_v42  ;;  %1446 = vset.pattern.permute.xlu0 %v1695_v42 }
 0x17c   : > { %941 = vperm.xlu1 %1442, %v539_v44   ;;  %953 = vperm.xlu0 %1446, %v1336_v45   ;;  %v2180_v45 = vld [vmem:[#allocation7 + $0x4] ss:$0 sm:$0xff] }
 0x180   : > { %1443 = vset.pattern.permute.xlu1 %v1693_v1  ;;  %1447 = vset.pattern.permute.xlu0 %v1693_v1 }
 0x181   : > { %635 = vperm.xlu1 %1443, %v1310_v46   ;;  %630 = vperm.xlu0 %1447, %v404_v47  }
 0x185   : > { %1445 = vset.pattern.permute.xlu1 %v1694_v41  ;;  %1449 = vset.pattern.permute.xlu0 %v1694_v41 }
 0x186   : > { %873 = vperm.xlu1 %1445, %v1310_v46   ;;  %869 = vperm.xlu0 %1449, %v404_v47  }
 0x18a   : > { %1448 = vset.pattern.permute.xlu1 %v1692_v0  ;;  %1452 = vset.pattern.permute.xlu0 %v1692_v0 }
 0x18b   : > { %726 = vperm.xlu1 %1448, %v549_v48   ;;  %741 = vperm.xlu0 %1452, %v1339_v49  }
 0x18f   : > { %1450 = vset.pattern.permute.xlu1 %v1695_v42  ;;  %1454 = vset.pattern.permute.xlu0 %v1695_v42 }
 0x190   : > { %949 = vperm.xlu1 %1450, %v549_v48   ;;  %961 = vperm.xlu0 %1454, %v1339_v49  }
 0x194   : > { %1451 = vset.pattern.permute.xlu1 %v1693_v1  ;;  %1455 = vset.pattern.permute.xlu0 %v1693_v1 }
 0x195   : > { %645 = vperm.xlu1 %1451, %v2068_v50   ;;  %640 = vperm.xlu0 %1455, %v2070_v51  }
 0x199   : > { %1453 = vset.pattern.permute.xlu1 %v1694_v41  ;;  %1457 = vset.pattern.permute.xlu0 %v1694_v41 }
 0x19a   : > { %881 = vperm.xlu1 %1453, %v2068_v50   ;;  %877 = vperm.xlu0 %1457, %v2070_v51  }
 0x19e   : > { %1456 = vset.pattern.permute.xlu1 %v1692_v0  ;;  %1460 = vset.pattern.permute.xlu0 %v1692_v0 }
 0x19f   : > { %736 = vperm.xlu1 %1456, %v2072_v52   ;;  %751 = vperm.xlu0 %1460, %v2076_v53  }
 0x1a3   : > { %1458 = vset.pattern.permute.xlu1 %v1695_v42  ;;  %1462 = vset.pattern.permute.xlu0 %v1695_v42 }
 0x1a4   : > { %957 = vperm.xlu1 %1458, %v2072_v52   ;;  %969 = vperm.xlu0 %1462, %v2076_v53   ;;  %v2193_v52 = vld [vmem:[#allocation7 + $0x5] ss:$0 sm:$0xff] }
 0x1a8   : > { %1459 = vset.pattern.permute.xlu1 %v1693_v1  ;;  %1463 = vset.pattern.permute.xlu0 %v1693_v1 }
 0x1a9   : > { %655 = vperm.xlu1 %1459, %v2078_v54   ;;  %650 = vperm.xlu0 %1463, %v2080_v55  }
 0x1ad   : > { %1461 = vset.pattern.permute.xlu1 %v1694_v41  ;;  %1465 = vset.pattern.permute.xlu0 %v1694_v41 }
 0x1ae   : > { %889 = vperm.xlu1 %1461, %v2078_v54   ;;  %885 = vperm.xlu0 %1465, %v2080_v55  }
 0x1b2   : > { %1464 = vset.pattern.permute.xlu1 %v1692_v0  ;;  %1468 = vset.pattern.permute.xlu0 %v1692_v0 }
 0x1b3   : > { %746 = vperm.xlu1 %1464, %v2082_v56   ;;  %761 = vperm.xlu0 %1468, %v2086_v57  }
 0x1b7   : > { %1466 = vset.pattern.permute.xlu1 %v1695_v42  ;;  %1470 = vset.pattern.permute.xlu0 %v1695_v42 }
 0x1b8   : > { %965 = vperm.xlu1 %1466, %v2082_v56   ;;  %977 = vperm.xlu0 %1470, %v2086_v57  }
 0x1bc   : > { %1467 = vset.pattern.permute.xlu1 %v1693_v1  ;;  %1471 = vset.pattern.permute.xlu0 %v1693_v1 }
 0x1bd   : > { %665 = vperm.xlu1 %1467, %v2088_v58   ;;  %660 = vperm.xlu0 %1471, %v2090_v59  }
 0x1c1   : > { %1469 = vset.pattern.permute.xlu1 %v1694_v41  ;;  %1473 = vset.pattern.permute.xlu0 %v1694_v41 }
 0x1c2   : > { %897 = vperm.xlu1 %1469, %v2088_v58   ;;  %893 = vperm.xlu0 %1473, %v2090_v59  }
 0x1c6   : > { %1472 = vset.pattern.permute.xlu1 %v1692_v0  ;;  %1476 = vset.pattern.permute.xlu0 %v1692_v0 }
 0x1c7   : > { %756 = vperm.xlu1 %1472, %v2092_v60   ;;  %771 = vperm.xlu0 %1476, %v2094_v61  }
 0x1cb   : > { %1474 = vset.pattern.permute.xlu1 %v1695_v42  ;;  %1478 = vset.pattern.permute.xlu0 %v1695_v42 }
 0x1cc   : > { %973 = vperm.xlu1 %1474, %v2092_v60   ;;  %985 = vperm.xlu0 %1478, %v2094_v61  }
 0x1d0   : > { %1475 = vset.pattern.permute.xlu1 %v1693_v1  ;;  %1479 = vset.pattern.permute.xlu0 %v1693_v1 }
 0x1d1   : > { %675 = vperm.xlu1 %1475, %v2096_v62   ;;  %670 = vperm.xlu0 %1479, %v2100_v63  }
 0x1d3   : > { %v616_v39 = vpop.permute.xlu0 %615  ;;  %v712_v40 = vpop.permute.xlu1 %711 }
 0x1d4   : > { %v689_v43 = vmul.f32 %v616_v39, %v1946_v6  ;;  %v785_v44 = vmul.f32 %v712_v40, %v1943_v5 }
 0x1d5   : > { %1477 = vset.pattern.permute.xlu1 %v1694_v41  ;;  %1481 = vset.pattern.permute.xlu0 %v1694_v41 }
 0x1d6   : > { %v801_v46 = vadd.f32 %v785_v44, %v689_v43  ;;  %905 = vperm.xlu1 %1477, %v2096_v62   ;;  %901 = vperm.xlu0 %1481, %v2100_v63  }
 0x1d8   : > { %v821_v47 = vadd.f32 %v2180_v45, %v801_v46  ;;  %v858_v48 = vpop.permute.xlu0 %857  ;;  %v938_v49 = vpop.permute.xlu1 %937 }
 0x1d9   : > { %v917_v50 = vmul.f32 %v858_v48, %v1946_v6  ;;  %v997_v51 = vmul.f32 %v938_v49, %v1943_v5 }
 0x1da   : > { %837 = vst [vmem:[%s2190_s26 + $0x8] sm:$0xff] %v821_v47  ;;  %1480 = vset.pattern.permute.xlu1 %v1692_v0  ;;  %1484 = vset.pattern.permute.xlu0 %v1692_v0 }
 0x1db   : > { %v1013_v53 = vadd.f32 %v997_v51, %v917_v50  ;;  %766 = vperm.xlu1 %1480, %v2102_v2   ;;  %781 = vperm.xlu0 %1484, %v2104_v35  }
 0x1dd   : > { %v1033_v54 = vadd.f32 %v2193_v52, %v1013_v53  ;;  %v611_v6 = vpop.permute.xlu0 %610  ;;  %v854_v55 = vpop.permute.xlu1 %853 }
 0x1de   : > { %v688_v57 = vmul.f32 %v611_v6, %v1940_v4  ;;  %v916_v63 = vmul.f32 %v854_v55, %v1940_v4 }
 0x1df   : > { %1049 = vst [vmem:[%s2201_s11 + $0x8] sm:$0xff] %v1033_v54  ;;  %1482 = vset.pattern.permute.xlu1 %v1695_v42  ;;  %1486 = vset.pattern.permute.xlu0 %v1693_v1 }
 0x1e0   : > { %981 = vperm.xlu1 %1482, %v2102_v2   ;;  %680 = vperm.xlu0 %1486, %v2108_v37  }
 0x1e2   : > { %v626_v5 = vpop.permute.xlu1 %625  ;;  %v707_v56 = vpop.permute.xlu0 %706 }
 0x1e3   : > { %v784_v58 = vmul.f32 %v707_v56, %v1937_v3  ;;  %v691_v43 = vmul.f32 %v626_v5, %v1964_v10 }
 0x1e4   : > { %1483 = vset.pattern.permute.xlu1 %v1693_v1  ;;  %1488 = vset.pattern.permute.xlu0 %v1694_v41 }
 0x1e5   : > { %v800_v59 = vadd.f32 %v784_v58, %v688_v57  ;;  %685 = vperm.xlu1 %1483, %v2106_v36   ;;  %909 = vperm.xlu0 %1488, %v2108_v37  }
 0x1e7   : > { %v820_v60 = vadd.f32 %v2180_v45, %v800_v59  ;;  %v866_v61 = vpop.permute.xlu1 %865  ;;  %v934_v62 = vpop.permute.xlu0 %933 }
 0x1e8   : > { %v996_v2 = vmul.f32 %v934_v62, %v1937_v3  ;;  %v919_v44 = vmul.f32 %v866_v61, %v1964_v10 }
 0x1e9   : > { %836 = vst [vmem:[%s2190_s26] sm:$0xff] %v820_v60  ;;  %1485 = vset.pattern.permute.xlu1 %v1694_v41  ;;  %1490 = vset.pattern.permute.xlu0 %v1695_v42 }
 0x1ea   : > { %v1012_v1 = vadd.f32 %v996_v2, %v916_v63  ;;  %913 = vperm.xlu1 %1485, %v2106_v36   ;;  %993 = vperm.xlu0 %1490, %v2104_v35  }
 0x1ec   : > { %v1032_v37 = vadd.f32 %v2193_v52, %v1012_v1  ;;  %v621_v39 = vpop.permute.xlu1 %620  ;;  %v722_v40 = vpop.permute.xlu0 %721 }
 0x1ed   : > { %v787_v4 = vmul.f32 %v722_v40, %v1960_v9  ;;  %v690_v46 = vmul.f32 %v621_v39, %v1954_v8 }
 0x1ee   : > { %1048 = vst [vmem:[%s2201_s11] sm:$0xff] %v1032_v37  ;;  %1487 = vset.pattern.permute.xlu1 %v1692_v0 }
 0x1ef   : > { %v803_v3 = vadd.f32 %v787_v4, %v691_v43  ;;  %776 = vperm.xlu1 %1487, %v2110_v38  }
 0x1f1   : > { %v823_v41 = vadd.f32 %v2180_v45, %v803_v3  ;;  %v946_v36 = vpop.permute.xlu0 %945  ;;  %v717_v35 = vpop.permute.xlu1 %716 }
 0x1f2   : > { %v999_v47 = vmul.f32 %v946_v36, %v1960_v9  ;;  %v786_v48 = vmul.f32 %v717_v35, %v1951_v7 }
 0x1f3   : > { %839 = vst [vmem:[%s2190_s26 + $0x18] sm:$0xff] %v823_v41  ;;  %1489 = vset.pattern.permute.xlu1 %v1695_v42 }
 0x1f4   : > { %v1015_v0 = vadd.f32 %v999_v47, %v919_v44  ;;  %v802_v49 = vadd.f32 %v786_v48, %v690_v46  ;;  %989 = vperm.xlu1 %1489, %v2110_v38  }
 0x1f6   : > { %v1035_v50 = vadd.f32 %v2193_v52, %v1015_v0  ;;  %v822_v51 = vadd.f32 %v2180_v45, %v802_v49  ;;  %v862_v53 = vpop.permute.xlu1 %861  ;;  %v732_v10 = vpop.permute.xlu0 %731 }
 0x1f7   : > { %v918_v6 = vmul.f32 %v862_v53, %v1954_v8  ;;  %v789_v5 = vmul.f32 %v732_v10, %v1980_v14 }
 0x1f8   : > { %1051 = vst [vmem:[%s2201_s11 + $0x18] sm:$0xff] %v1035_v50  ;;  %838 = vst [vmem:[%s2190_s26 + $0x10] sm:$0xff] %v822_v51 }
 0x1fb   : > { %v942_v54 = vpop.permute.xlu1 %941  ;;  %v954_v9 = vpop.permute.xlu0 %953 }
 0x1fc   : > { %v998_v42 = vmul.f32 %v942_v54, %v1951_v7  ;;  %v1001_v62 = vmul.f32 %v954_v9, %v1980_v14 }
 0x1fe   : > { %v1014_v55 = vadd.f32 %v998_v42, %v918_v6 }
 0x200   : > { %v1034_v38 = vadd.f32 %v2193_v52, %v1014_v55  ;;  %v636_v56 = vpop.permute.xlu1 %635  ;;  %v631_v57 = vpop.permute.xlu0 %630 }
 0x201   : > { %v693_v58 = vmul.f32 %v636_v56, %v1976_v13  ;;  %v692_v39 = vmul.f32 %v631_v57, %v1967_v11 }
 0x202   : > { %1050 = vst [vmem:[%s2201_s11 + $0x10] sm:$0xff] %v1034_v38 }
 0x203   : > { %v805_v59 = vadd.f32 %v789_v5, %v693_v58 }
 0x205   : > { %v825_v60 = vadd.f32 %v2180_v45, %v805_v59  ;;  %v874_v61 = vpop.permute.xlu1 %873  ;;  %v870_v7 = vpop.permute.xlu0 %869 }
 0x206   : > { %v921_v8 = vmul.f32 %v874_v61, %v1976_v13  ;;  %v920_v13 = vmul.f32 %v870_v7, %v1967_v11 }
 0x207   : > { %841 = vst [vmem:[%s2190_s26 + $0x28] sm:$0xff] %v825_v60 }
 0x208   : > { %v1017_v63 = vadd.f32 %v1001_v62, %v921_v8 }
 0x20a   : > { %v1037_v2 = vadd.f32 %v2193_v52, %v1017_v63  ;;  %v727_v1 = vpop.permute.xlu1 %726  ;;  %v742_v37 = vpop.permute.xlu0 %741 }
 0x20b   : > { %v788_v40 = vmul.f32 %v727_v1, %v1970_v12  ;;  %v791_v35 = vmul.f32 %v742_v37, %v1996_v18 }
 0x20c   : > { %1053 = vst [vmem:[%s2201_s11 + $0x28] sm:$0xff] %v1037_v2 }
 0x20d   : > { %v804_v43 = vadd.f32 %v788_v40, %v692_v39 }
 0x20f   : > { %v824_v4 = vadd.f32 %v2180_v45, %v804_v43  ;;  %v950_v14 = vpop.permute.xlu1 %949  ;;  %v962_v3 = vpop.permute.xlu0 %961 }
 0x210   : > { %v1000_v41 = vmul.f32 %v950_v14, %v1970_v12  ;;  %v1003_v11 = vmul.f32 %v962_v3, %v1996_v18 }
 0x211   : > { %840 = vst [vmem:[%s2190_s26 + $0x20] sm:$0xff] %v824_v4 }
 0x212   : > { %v1016_v36 = vadd.f32 %v1000_v41, %v920_v13 }
 0x214   : > { %v1036_v44 = vadd.f32 %v2193_v52, %v1016_v36  ;;  %v646_v46 = vpop.permute.xlu1 %645  ;;  %v641_v47 = vpop.permute.xlu0 %640 }
 0x215   : > { %v695_v48 = vmul.f32 %v646_v46, %v1992_v17  ;;  %v694_v6 = vmul.f32 %v641_v47, %v1983_v15 }
 0x216   : > { %1052 = vst [vmem:[%s2201_s11 + $0x20] sm:$0xff] %v1036_v44 }
 0x217   : > { %v807_v0 = vadd.f32 %v791_v35, %v695_v48 }
 0x219   : > { %v827_v49 = vadd.f32 %v2180_v45, %v807_v0  ;;  %v882_v50 = vpop.permute.xlu1 %881  ;;  %v878_v51 = vpop.permute.xlu0 %877 }
 0x21a   : > { %v923_v12 = vmul.f32 %v882_v50, %v1992_v17  ;;  %v922_v17 = vmul.f32 %v878_v51, %v1983_v15 }
 0x21b   : > { %843 = vst [vmem:[%s2190_s26 + $0x38] sm:$0xff] %v827_v49 }
 0x21c   : > { %v1019_v53 = vadd.f32 %v1003_v11, %v923_v12 }
 0x21e   : > { %v1039_v10 = vadd.f32 %v2193_v52, %v1019_v53  ;;  %v737_v54 = vpop.permute.xlu1 %736  ;;  %v752_v9 = vpop.permute.xlu0 %751 }
 0x21f   : > { %v790_v42 = vmul.f32 %v737_v54, %v1986_v16  ;;  %v793_v58 = vmul.f32 %v752_v9, %v2012_v22 }
 0x220   : > { %1055 = vst [vmem:[%s2201_s11 + $0x38] sm:$0xff] %v1039_v10 }
 0x221   : > { %v806_v55 = vadd.f32 %v790_v42, %v694_v6 }
 0x223   : > { %v826_v5 = vadd.f32 %v2180_v45, %v806_v55  ;;  %v958_v18 = vpop.permute.xlu1 %957  ;;  %v970_v38 = vpop.permute.xlu0 %969 }
 0x224   : > { %v1002_v56 = vmul.f32 %v958_v18, %v1986_v16  ;;  %v1005_v15 = vmul.f32 %v970_v38, %v2012_v22 }
 0x225   : > { %842 = vst [vmem:[%s2190_s26 + $0x30] sm:$0xff] %v826_v5 }
 0x226   : > { %v1018_v57 = vadd.f32 %v1002_v56, %v922_v17 }
 0x228   : > { %v1038_v59 = vadd.f32 %v2193_v52, %v1018_v57  ;;  %v656_v60 = vpop.permute.xlu1 %655  ;;  %v651_v61 = vpop.permute.xlu0 %650 }
 0x229   : > { %v697_v62 = vmul.f32 %v656_v60, %v2008_v21  ;;  %v696_v43 = vmul.f32 %v651_v61, %v1999_v19 }
 0x22a   : > { %1054 = vst [vmem:[%s2201_s11 + $0x30] sm:$0xff] %v1038_v59 }
 0x22b   : > { %v809_v8 = vadd.f32 %v793_v58, %v697_v62 }
 0x22d   : > { %v829_v7 = vadd.f32 %v2180_v45, %v809_v8  ;;  %v890_v63 = vpop.permute.xlu1 %889  ;;  %v886_v2 = vpop.permute.xlu0 %885 }
 0x22e   : > { %v925_v16 = vmul.f32 %v890_v63, %v2008_v21  ;;  %v924_v21 = vmul.f32 %v886_v2, %v1999_v19 }
 0x22f   : > { %845 = vst [vmem:[%s2190_s26 + $0x48] sm:$0xff] %v829_v7 }
 0x230   : > { %v1021_v1 = vadd.f32 %v1005_v15, %v925_v16 }
 0x232   : > { %v1041_v37 = vadd.f32 %v2193_v52, %v1021_v1  ;;  %v747_v39 = vpop.permute.xlu1 %746  ;;  %v762_v40 = vpop.permute.xlu0 %761 }
 0x233   : > { %v792_v4 = vmul.f32 %v747_v39, %v2002_v20  ;;  %v795_v35 = vmul.f32 %v762_v40, %v2028_v26 }
 0x234   : > { %1057 = vst [vmem:[%s2201_s11 + $0x48] sm:$0xff] %v1041_v37 }
 0x235   : > { %v808_v14 = vadd.f32 %v792_v4, %v696_v43 }
 0x237   : > { %v828_v3 = vadd.f32 %v2180_v45, %v808_v14  ;;  %v966_v22 = vpop.permute.xlu1 %965  ;;  %v978_v13 = vpop.permute.xlu0 %977 }
 0x238   : > { %v1004_v41 = vmul.f32 %v966_v22, %v2002_v20  ;;  %v1007_v19 = vmul.f32 %v978_v13, %v2028_v26 }
 0x239   : > { %844 = vst [vmem:[%s2190_s26 + $0x40] sm:$0xff] %v828_v3 }
 0x23a   : > { %v1020_v36 = vadd.f32 %v1004_v41, %v924_v21 }
 0x23c   : > { %v1040_v44 = vadd.f32 %v2193_v52, %v1020_v36  ;;  %v666_v46 = vpop.permute.xlu1 %665  ;;  %v661_v47 = vpop.permute.xlu0 %660 }
 0x23d   : > { %v699_v48 = vmul.f32 %v666_v46, %v2024_v25  ;;  %v698_v54 = vmul.f32 %v661_v47, %v2015_v23 }
 0x23e   : > { %1056 = vst [vmem:[%s2201_s11 + $0x40] sm:$0xff] %v1040_v44 }
 0x23f   : > { %v811_v0 = vadd.f32 %v795_v35, %v699_v48 }
 0x241   : > { %v831_v49 = vadd.f32 %v2180_v45, %v811_v0  ;;  %v898_v50 = vpop.permute.xlu1 %897  ;;  %v894_v11 = vpop.permute.xlu0 %893 }
 0x242   : > { %v927_v20 = vmul.f32 %v898_v50, %v2024_v25  ;;  %v926_v25 = vmul.f32 %v894_v11, %v2015_v23 }
 0x243   : > { %847 = vst [vmem:[%s2190_s26 + $0x58] sm:$0xff] %v831_v49 }
 0x244   : > { %v1023_v12 = vadd.f32 %v1007_v19, %v927_v20 }
 0x246   : > { %v1043_v51 = vadd.f32 %v2193_v52, %v1023_v12  ;;  %v757_v53 = vpop.permute.xlu1 %756  ;;  %v772_v10 = vpop.permute.xlu0 %771 }
 0x247   : > { %v794_v9 = vmul.f32 %v757_v53, %v2018_v24  ;;  %v797_v38 = vmul.f32 %v772_v10, %v2044_v30 }
 0x248   : > { %1059 = vst [vmem:[%s2201_s11 + $0x58] sm:$0xff] %v1043_v51 }
 0x249   : > { %v810_v6 = vadd.f32 %v794_v9, %v698_v54 }
 0x24b   : > { %v830_v42 = vadd.f32 %v2180_v45, %v810_v6  ;;  %v974_v26 = vpop.permute.xlu1 %973  ;;  %v986_v55 = vpop.permute.xlu0 %985 }
 0x24c   : > { %v1006_v5 = vmul.f32 %v974_v26, %v2018_v24  ;;  %v1009_v23 = vmul.f32 %v986_v55, %v2044_v30 }
 0x24d   : > { %846 = vst [vmem:[%s2190_s26 + $0x50] sm:$0xff] %v830_v42 }
 0x24e   : > { %v1022_v18 = vadd.f32 %v1006_v5, %v926_v25 }
 0x250   : > { %v1042_v17 = vadd.f32 %v2193_v52, %v1022_v18  ;;  %v676_v56 = vpop.permute.xlu1 %675  ;;  %v671_v57 = vpop.permute.xlu0 %670 }
 0x251   : > { %v701_v58 = vmul.f32 %v676_v56, %v2040_v29  ;;  %v700_v16 = vmul.f32 %v671_v57, %v2031_v27 }
 0x252   : > { %1058 = vst [vmem:[%s2201_s11 + $0x50] sm:$0xff] %v1042_v17 }
 0x253   : > { %v813_v59 = vadd.f32 %v797_v38, %v701_v58 }
 0x255   : > { %v833_v60 = vadd.f32 %v2180_v45, %v813_v59  ;;  %v906_v61 = vpop.permute.xlu1 %905  ;;  %v902_v62 = vpop.permute.xlu0 %901 }
 0x256   : > { %v929_v24 = vmul.f32 %v906_v61, %v2040_v29  ;;  %v928_v29 = vmul.f32 %v902_v62, %v2031_v27 }
 0x257   : > { %849 = vst [vmem:[%s2190_s26 + $0x68] sm:$0xff] %v833_v60 }
 0x258   : > { %v1025_v8 = vadd.f32 %v1009_v23, %v929_v24 }
 0x25a   : > { %v1045_v7 = vadd.f32 %v2193_v52, %v1025_v8  ;;  %v767_v63 = vpop.permute.xlu1 %766  ;;  %v782_v15 = vpop.permute.xlu0 %781 }
 0x25b   : > { %v796_v2 = vmul.f32 %v767_v63, %v2034_v28  ;;  %v799_v4 = vmul.f32 %v782_v15, %v2060_v34 }
 0x25c   : > { %1061 = vst [vmem:[%s2201_s11 + $0x68] sm:$0xff] %v1045_v7 }
 0x25d   : > { %v812_v1 = vadd.f32 %v796_v2, %v700_v16 }
 0x25f   : > { %v832_v37 = vadd.f32 %v2180_v45, %v812_v1  ;;  %v982_v30 = vpop.permute.xlu1 %981  ;;  %v681_v39 = vpop.permute.xlu0 %680 }
 0x260   : > { %v1008_v40 = vmul.f32 %v982_v30, %v2034_v28  ;;  %v702_v48 = vmul.f32 %v681_v39, %v2047_v31 }
 0x261   : > { %848 = vst [vmem:[%s2190_s26 + $0x60] sm:$0xff] %v832_v37 }
 0x262   : > { %v1024_v43 = vadd.f32 %v1008_v40, %v928_v29 }
 0x264   : > { %v1044_v14 = vadd.f32 %v2193_v52, %v1024_v43  ;;  %v686_v3 = vpop.permute.xlu1 %685  ;;  %v910_v22 = vpop.permute.xlu0 %909 }
 0x265   : > { %v703_v13 = vmul.f32 %v686_v3, %v2056_v33  ;;  %v930_v50 = vmul.f32 %v910_v22, %v2047_v31 }
 0x266   : > { %1060 = vst [vmem:[%s2201_s11 + $0x60] sm:$0xff] %v1044_v14 }
 0x267   : > { %v815_v21 = vadd.f32 %v799_v4, %v703_v13 }
 0x269   : > { %v835_v27 = vadd.f32 %v2180_v45, %v815_v21  ;;  %v914_v41 = vpop.permute.xlu1 %913  ;;  %v994_v28 = vpop.permute.xlu0 %993 }
 0x26a   : > { %v931_v36 = vmul.f32 %v914_v41, %v2056_v33  ;;  %v1011_v35 = vmul.f32 %v994_v28, %v2060_v34 }
 0x26b   : > { %851 = vst [vmem:[%s2190_s26 + $0x78] sm:$0xff] %v835_v27 }
 0x26c   : > { %v1027_v44 = vadd.f32 %v1011_v35, %v931_v36 }
 0x26e   : > { %v1047_v46 = vadd.f32 %v2193_v52, %v1027_v44  ;;  %v777_v47 = vpop.permute.xlu1 %776 }
 0x26f   : > { %v798_v0 = vmul.f32 %v777_v47, %v2050_v32 }
 0x270   : > { %1063 = vst [vmem:[%s2201_s11 + $0x78] sm:$0xff] %v1047_v46 }
 0x271   : > { %v814_v49 = vadd.f32 %v798_v0, %v702_v48 }
 0x273   : > { %v834_v33 = vadd.f32 %v2180_v45, %v814_v49  ;;  %v990_v34 = vpop.permute.xlu1 %989 }
 0x274   : > { %v1010_v19 = vmul.f32 %v990_v34, %v2050_v32 }
 0x275   : > { %850 = vst [vmem:[%s2190_s26 + $0x70] sm:$0xff] %v834_v33 }
 0x276   : > { %v1026_v20 = vadd.f32 %v1010_v19, %v930_v50 }
 0x277   : > { %1592 = shalt.err (!%p1589_p8)
}
 0x278   : > { %s1593_s10 = scalar_lea.hbm %s2341_s25, 2048  ;;  %s1597_s23 = scalar_lea.hbm %s2438_s3, 4096 }
 0x279   : > { %p1594_p10 = scmp.ne.s32.totalorder %s2341_s25, %s1593_s10  ;;  %p1598_p9 = scmp.lt.u32.totalorder %s2341_s25, %s2438_s3 }
 0x27a   : > { %p1599_p11 = scmp.lt.u32.totalorder %s1597_s23, %s1593_s10  ;;  %p1601_p5 = scmp.lt.u32.totalorder %s1593_s10, %s2341_s25 }
 0x27b   : > { %p1595_p2 = pnand %p1594_p10, %p2460_p0 }
 0x27c   : > { %p1600_p4 = por %p1599_p11, %p1598_p9 }
 0x27d   : > { %p1596_p12 = pneg %p1595_p2 }
 0x27e   : > { %p1602_p6 = por %p1601_p5, %p1600_p4 }
 0x280   : > { %p1603_p13 = pnand %p1602_p6, %p1596_p12 }
 0x282   : > { %1606 = shalt.err (!%p1603_p13)
}
 0x283   : > { %s1697_s6 = smov 128   ;;  %s1698_s7 = smov 8   ;;  %v1046_v31 = vadd.f32 %v2193_v52, %v1026_v20 }
 0x284   : > { %1360 = dma.vmem_to_hbm [thread:$0]  (%p2460_p0), %s2343_s5, 2048, %s2341_s25, %s1065_s30, %s1697_s6, %s1697_s6, %s1698_s7  }
 0x285   : > { %s2383_s8 = scalar_lea.hbm %s2439_s4, %s1264_s13  ;;  %1062 = vst [vmem:[%s2201_s11 + $0x70] sm:$0xff] %v1046_v31  ;;  %s1070_s10 = scalar_lea.sflag [#allocation10], %s1909_s0 }
 0x286   : > { %s1607_s29 = scalar_lea.vmem %s2387_s9, 2048  ;;  %s1699_s5 = smov [#allocation9]  }
 0x287   : > { %p1608_p7 = scmp.ne.s32.totalorder %s2387_s9, %s1607_s29  ;;  %s1611_s19 = sshll.u32 %s1699_s5, 4  ;;  %s1612_s19 = int_to_ptr.vmem [resolvable:$false] %s1611_s19 }
 0x288   : > { %s1613_s25 = scalar_lea.vmem %s1612_s19, 4096  ;;  %p1614_p8 = scmp.lt.s32.totalorder %s2387_s9, %s1612_s19 }
 0x289   : > { %p1609_p3 = pnand %p1608_p7, %p2460_p0  ;;  %p1615_p10 = scmp.lt.s32.totalorder %s1613_s25, %s1607_s29 }
 0x28b   : > { %p1610_p1 = pneg %p1609_p3  ;;  %p1616_p2 = por %p1615_p10, %p1614_p8 }
 0x28d   : > { %p1617_p12 = pnand %p1616_p2, %p1610_p1 }
 0x28f   : > { %1620 = shalt.err (!%p1617_p12)
}
 0x290   : > { %s1621_s11 = scalar_lea.hbm %s2383_s8, 2048  ;;  %s1625_s22 = scalar_lea.hbm %s2439_s4, 4096 }
 0x291   : > { %p1622_p9 = scmp.ne.s32.totalorder %s2383_s8, %s1621_s11  ;;  %p1626_p5 = scmp.lt.u32.totalorder %s2383_s8, %s2439_s4 }
 0x292   : > { %p1627_p6 = scmp.lt.u32.totalorder %s1625_s22, %s1621_s11  ;;  %p1629_p7 = scmp.lt.u32.totalorder %s1621_s11, %s2383_s8 }
 0x293   : > { %p1623_p11 = pnand %p1622_p9, %p2460_p0 }
 0x294   : > { %p1628_p13 = por %p1627_p6, %p1626_p5 }
 0x295   : > { %p1624_p4 = pneg %p1623_p11 }
 0x296   : > { %p1630_p3 = por %p1629_p7, %p1628_p13 }
 0x298   : > { %p1631_p1 = pnand %p1630_p3, %p1624_p4 }
 0x29a   : > { %1634 = shalt.err (!%p1631_p1)
}
 0x29b   : > { %1361 = dma.vmem_to_hbm [thread:$0]  (%p2460_p0), %s2387_s9, 2048, %s2383_s8, %s1070_s10, %s1697_s6, %s1697_s6, %s1698_s7  }
 0x29c PF: > { %s1114_s20 = sand.u32 1, %s1673_s15   ;;  %p2461_p8 = scmp.ne.s32.totalorder %s2449_s28, 0 }
 0x29d   : > { %p2462_p10 = scmp.ge.s32.totalorder %s1685_s18, 2  ;;  %s1115_s14 = scalar_lea.sflag [#allocation4], %s1114_s20 }
 0x29f   : > { %p1376_p2 = pnand %p2462_p10, %p2461_p8 }
 0x2a1   : > { %1664 = dma.done.wait (!%p1376_p2), %s1115_s14, 2048  }
 0x2a2   : > { %1666 = vsyncadd (!%p1376_p2), %s1115_s14, 4294965248  ;;  %s1124_s27 = scalar_lea.sflag [#allocation10], %s1114_s20 }
 0x2a3   : > { %1668 = dma.done.wait (!%p1376_p2), %s1124_s27, 2048  }
 0x2a4   : > { %1670 = vsyncadd (!%p1376_p2), %s1124_s27, 4294965248  ;;  %p24_p0 = scmp.ge.s32.totalorder %s1750_s21, 4   ;;  %s2463_s15 = smov %s1677_s16 }
 0x2a5   : > { %s2464_s16 = smov %s1681_s17  ;;  %s2465_s17 = smov %s1762_s24 }
 0x2a6   : > { %s2466_s18 = smov %s1750_s21  ;;  %26 = sbr.rel (!%p24_p0) target bundleno = 11 (0xb), region = 111 }
 0x2ad   :  { %1129 = vsyncpa [#allocation3], 1 }
 0x2ae   :  { %1131 = vsyncpa [#allocation3 + $0x1], 1 }
 0x2af   :  { %1132 = vsyncpa [#allocation6], 1 }
 0x2b0   :  { %1134 = vsyncpa [#allocation6 + $0x1], 1 }
 0x2b1   :  { %1135 = vsyncpa [#allocation4], 1 }
 0x2b2   :  { %1137 = vsyncpa [#allocation4 + $0x1], 1 }
 0x2b3   :  { %1138 = vsyncpa [#allocation10], 1 }
 0x2b4   :  { %1140 = vsyncpa [#allocation10 + $0x1], 1 }

</bundles_post_ra>
